<compile_context>
chip_gen: v6e
topology: v6e:2x2x1
jax: 0.10.0
libtpu: 0.0.40
codegen_flags: <defaults>
</compile_context>

<pallas_src>
import functools
import numpy as np
import jax
import jax.numpy as jnp
from jax.experimental import pallas as pl
from jax.experimental.pallas import tpu as pltpu

KH = KW = 3     # conv kernel size
G_FOLD = 8      # spatial positions folded into the contraction (MXU occupancy)


def _round_up(x, m):
    return -(-x // m) * m


# ----------------------------------------------------------------------------
# Pallas kernel: grid = (batch step i, spatial step j)
# ----------------------------------------------------------------------------
def _iqa_kernel(x_ref, w_ref, wfc_ref, bfc_ref, o_ref, pooled_acc,
                *, G, Ch, bt, tSg, inv_hw):
    """x_ref  : (G*Kpad, bt*tSg) bf16  folded im2col patches (lane-dense)
       w_ref  : (G*Ch, G*Kpad)   bf16  block-diagonal conv weight
       wfc_ref: (Ch, 1)          f32   FC weight
       bfc_ref: (1, 1)           f32   FC bias
       o_ref  : (1, bt)          f32   per-image scores
       pooled_acc: (Ch, bt)      f32   running spatial sum (scratch)"""
    j = pl.program_id(1)

    @pl.when(j == 0)
    def _():
        pooled_acc[...] = jnp.zeros_like(pooled_acc)

    # 3x3 "same" conv as ONE bf16 im2col contraction (f32 accumulate) on the MXU.
    acc = jnp.dot(w_ref[...], x_ref[...],
                  preferred_element_type=jnp.float32)       # (G*Ch, bt*tSg)
    feat = jnp.maximum(acc, 0.0)                            # ReLU (VPU)

    # Un-fold the G spatial groups: sublane-aligned slab adds on the VPU.
    part = feat[0:Ch, :]
    for g in range(1, G):
        part = part + feat[g * Ch:(g + 1) * Ch, :]
    # Per-image spatial partial sum: XLU lane reduce (tSg is a multiple of 128,
    # so the lane split is layout-clean). Padded pixels are exact zeros.
    part = jnp.sum(part.reshape(Ch, bt, tSg), axis=-1)      # (Ch, bt)
    pooled_acc[...] += part

    @pl.when(j == pl.num_programs(1) - 1)
    def _():
        scores = (jnp.sum(pooled_acc[...] * wfc_ref[...], axis=0, keepdims=True)
                  * inv_hw + bfc_ref[...])                  # mean-pool + FC + bias
        o_ref[...] = scores                                 # (1, bt)


# ----------------------------------------------------------------------------
# Static (trace-time) block-size planning, generation aware
# ----------------------------------------------------------------------------
def _plan(B, HW, Ch, Kpad, G):
    Kfold = G * Kpad
    try:
        vmem_cap = int(getattr(pltpu.get_tpu_info(), "vmem_capacity_bytes",
                               64 << 20))
    except Exception:
        vmem_cap = 64 << 20                      # conservative (v7x per-TC) fallback
    budget = vmem_cap // 4                       # target ~25% of physical VMEM/step
    # per lane-column: bf16 patches x2 (double-buffer) + f32 conv acc / ReLU temps
    bytes_per_col = Kfold * 2 * 2 + G * Ch * 4 * 2
    max_cols = max(128, (budget // bytes_per_col) // 128 * 128)

    HWg_128 = _round_up(-(-HW // G), 128)        # folded per-image length, 128-aligned
    bt_cap = -(-B // 2) if B > 1 else 1          # >=2 "parallel" steps for v7x 2 TCs
    if HWg_128 <= max_cols:
        bt = max(1, min(bt_cap, max_cols // HWg_128))
        tSg, n_sp = HWg_128, 1
    else:                                        # spatial tiling (large resolutions)
        bt, tSg = 1, max_cols
        n_sp = -(-HWg_128 // max_cols)
    HWg = n_sp * tSg
    n_bsteps = -(-B // bt)

    block_bytes = Kfold * bt * tSg * 2
    est = 2 * block_bytes + 2 * G * Ch * bt * tSg * 4 + Kfold * Kfold * 2 + (2 << 20)
    vmem_limit = int(min(3 * vmem_cap // 4, max(32 << 20, 2 * est)))
    return Kfold, bt, tSg, n_sp, HWg, n_bsteps, vmem_limit


# ----------------------------------------------------------------------------
# Forward pass
# ----------------------------------------------------------------------------
@jax.jit
def _iqa_forward(x_nchw, wconv, wfc, bfc):
    """x_nchw: (B, Cin, H, W) float32 -> (B,) quality scores."""
    B, Cin, H, W = x_nchw.shape
    Ch = wconv.shape[-1]
    HW = H * W
    K = KH * KW * Cin
    Kpad = max(8, _round_up(K, 8))               # 27 -> 32
    G = G_FOLD

    Kfold, bt, tSg, n_sp, HWg, n_bsteps, vmem_limit = _plan(B, HW, Ch, Kpad, G)
    B_pad, HW_pad = n_bsteps * bt, HWg * G

    # ---- wrapper-side im2col, all in bf16 (fuses under jit) -----------------
    x = x_nchw.astype(jnp.bfloat16)
    xb = jnp.pad(x, ((0, B_pad - B), (0, 0), (0, 0), (0, 0)))
    xp = jnp.pad(xb, ((0, 0), (0, 0), (1, 1), (1, 1)))          # "same" halo
    shards = [xp[:, :, kh:kh + H, kw:kw + W]
              for kh in range(KH) for kw in range(KW)]          # 9 x (B_pad,Cin,H,W)
    pat = jnp.stack(shards, axis=1).reshape(B_pad, K, HW)       # K order = (kh,kw,cin)
    pat = jnp.pad(pat, ((0, 0), (0, Kpad - K), (0, HW_pad - HW)))

    # fold G consecutive pixels into the contraction: row g*Kpad+k <- pixel s*G+g
    pat = pat.reshape(B_pad, Kpad, HWg, G)
    pat = jnp.transpose(pat, (0, 3, 1, 2)).reshape(B_pad, Kfold, HWg)
    # arrange as (step, Kfold, bt*tSg) blocks; step index = i_batch * n_sp + j_spatial
    pat = pat.reshape(n_bsteps, bt, Kfold, n_sp, tSg)
    pat = jnp.transpose(pat, (0, 3, 2, 1, 4)).reshape(n_bsteps * n_sp, Kfold, bt * tSg)

    # block-diagonal conv weight (G replicas) in (kh,kw,cin) order, bf16 MXU feed.
    w2 = jnp.pad(wconv.reshape(K, Ch).T, ((0, 0), (0, Kpad - K)))      # (Ch, Kpad) f32
    w_blk = jnp.kron(jnp.eye(G, dtype=w2.dtype), w2).astype(jnp.bfloat16)

    kern = functools.partial(_iqa_kernel, G=G, Ch=Ch, bt=bt, tSg=tSg,
                             inv_hw=1.0 / HW)

    # TODO(synk): on v7x an fp8(e4m3) feed for pat/w_blk would halve patch DMA
    # again but needs score-drift validation; bf16 kept for all generations.
    out = pl.pallas_call(
        kern,
        out_shape=jax.ShapeDtypeStruct((n_bsteps, 1, bt), jnp.float32),
        grid_spec=pltpu.PrefetchScalarGridSpec(
            num_scalar_prefetch=0,
            grid=(n_bsteps, n_sp),
            in_specs=[
                pl.BlockSpec((None, Kfold, bt * tSg),
                             lambda i, j: (i * n_sp + j, 0, 0)),   # folded patches
                pl.BlockSpec((G * Ch, Kfold), lambda i, j: (0, 0)),  # conv weight
                pl.BlockSpec((Ch, 1), lambda i, j: (0, 0)),          # fc weight
                pl.BlockSpec((1, 1), lambda i, j: (0, 0)),           # fc bias
            ],
            out_specs=pl.BlockSpec((None, 1, bt), lambda i, j: (i, 0, 0)),
            scratch_shapes=[pltpu.VMEM((Ch, bt), jnp.float32)],      # pooled acc
        ),
        compiler_params=pltpu.CompilerParams(
            dimension_semantics=("parallel", "arbitrary"),
            vmem_limit_bytes=vmem_limit),
    )(pat, w_blk, wfc, bfc)

    return out.reshape(B_pad)[:B]


# ----------------------------------------------------------------------------
# Pure-JAX reference (f32) for correctness checking
# ----------------------------------------------------------------------------
def _reference_scores(x_nchw, wconv, wfc, bfc):
    conv = jax.lax.conv_general_dilated(
        x_nchw, wconv, window_strides=(1, 1), padding="SAME",
        dimension_numbers=("NCHW", "HWIO", "NCHW"),
        precision=jax.lax.Precision.HIGHEST)
    feat = jnp.maximum(conv, 0.0)
    pooled = jnp.mean(feat, axis=(2, 3))           # (B, Ch)
    return (pooled @ wfc + bfc[0, 0])[:, 0]        # (B,)


# ----------------------------------------------------------------------------
# Glue mirroring the PyTorch module
# ----------------------------------------------------------------------------
def imread2tensor(img):
    """HWC image -> CHW float32 / 255 (matches torch transpose(2,0,1)/255)."""
    arr = jnp.asarray(np.float32(img)) / 255.0
    return jnp.transpose(arr, (2, 0, 1))


def _init_params(key, cin=3, ch=32):
    k1, k2, k3 = jax.random.split(key, 3)
    wconv = jax.random.normal(k1, (KH, KW, cin, ch), jnp.float32) * 0.1
    wfc = jax.random.normal(k2, (ch, 1), jnp.float32) * 0.1
    bfc = jax.random.normal(k3, (1, 1), jnp.float32)
    return wconv, wfc, bfc


class InferenceModel:
    """JAX/Pallas counterpart of mmedit InferenceModel (NR quality scorer)."""

    # TODO(synk): the real net comes from ARCH_REGISTRY / DEFAULT_CONFIGS (and
    # has an extra 'fid' branch); a synthetic conv->ReLU->GAP->FC NR scorer
    # stands in here.
    def __init__(self, metric_name="synthetic_nr", metric_mode="NR",
                 as_loss=False, lower_better=False, hidden_channels=32, seed=0):
        self.metric_name = metric_name
        self.metric_mode = metric_mode
        self.as_loss = as_loss
        self.lower_better = lower_better
        self.wconv, self.wfc, self.bfc = _init_params(
            jax.random.PRNGKey(seed), cin=3, ch=hidden_channels)

    def _score(self, x_nchw):
        return _iqa_forward(x_nchw.astype(jnp.float32),
                            self.wconv, self.wfc, self.bfc)

    def forward(self, target, ref=None, **kwargs):
        # non-tensor input path: imread2tensor + unsqueeze(0)
        if not isinstance(target, jax.Array):
            target = imread2tensor(target)[None]  # (1, 3, H, W)
            if self.metric_mode == "FR":
                assert ref is not None, \
                    "Please specify reference image for Full Reference metric"
                ref = imread2tensor(ref)[None]
        if self.metric_mode == "FR":
            # TODO(synk): the real FR net is registry-dependent; score both
            # images with the same NR backbone as a synthetic stand-in.
            return self._score(target) - self._score(ref)
        return self._score(target)  # metric_mode == 'NR'

    __call__ = forward


# ----------------------------------------------------------------------------
if __name__ == "__main__":
    model = InferenceModel(metric_name="synthetic_nr", metric_mode="NR", seed=0)

    # batch tensor path (target is already an array), NCHW like PyTorch
    target = jax.random.uniform(jax.random.PRNGKey(0), (2, 3, 16, 16),
                                jnp.float32)
    scores = jax.block_until_ready(model(target))
    assert scores.shape == (2,)

    # numerical check against a pure-JAX f32 reference (bf16 MXU feeds -> loose tol)
    ref = jax.block_until_ready(
        _reference_scores(target, model.wconv, model.wfc, model.bfc))
    np.testing.assert_allclose(np.asarray(scores), np.asarray(ref),
                               rtol=2e-2, atol=2e-2)

    # raw HWC image path (imread2tensor + unsqueeze(0))
    img = np.array(
        jax.random.randint(jax.random.PRNGKey(1), (16, 16, 3), 0, 256),
        dtype=np.uint8)
    score1 = jax.block_until_ready(model(img))
    assert score1.shape == (1,)

    print("KERNEL_OK")
</pallas_src>

<mosaic_0001>
module attributes {stable_mosaic.version = 11 : i64} {
  func.func @_iqa_kernel(%arg0: i32, %arg1: i32, %arg2: memref<1x256x128xbf16, #tpu.memory_space<vmem>>, %arg3: memref<256x256xbf16, #tpu.memory_space<vmem>>, %arg4: memref<32x1xf32, #tpu.memory_space<vmem>>, %arg5: memref<1x1xf32, #tpu.memory_space<vmem>>, %arg6: memref<1x1x1xf32, #tpu.memory_space<vmem>>, %arg7: memref<32x1xf32, #tpu.memory_space<vmem>>) attributes {dimension_semantics = [#tpu.dimension_semantics<parallel>, #tpu.dimension_semantics<arbitrary>], iteration_bounds = array<i64: 2, 1>, scalar_prefetch = 0 : i64, scratch_operands = 1 : i64, tpu.core_type = #tpu.core_type<tc>, window_params = [{transform_indices = @transform_0, window_bounds = array<i64: 1, 256, 128>}, {pipeline_mode = #tpu.pipeline_mode<synchronous>, transform_indices = @transform_1, window_bounds = array<i64: 256, 256>}, {pipeline_mode = #tpu.pipeline_mode<synchronous>, transform_indices = @transform_2, window_bounds = array<i64: 32, 1>}, {pipeline_mode = #tpu.pipeline_mode<synchronous>, transform_indices = @transform_3, window_bounds = array<i64: 1, 1>}, {transform_indices = @transform_4, window_bounds = array<i64: 1, 1, 1>}]} {
    %c0_i32 = arith.constant 0 : i32
    %0 = arith.cmpi eq, %arg1, %c0_i32 : i32
    %1 = arith.extui %0 : i1 to i32
    %c0_i32_0 = arith.constant 0 : i32
    %2 = arith.cmpi ne, %1, %c0_i32_0 : i32
    scf.if %2 {
      %cst_13 = arith.constant 0.000000e+00 : f32
      %32 = vector.broadcast %cst_13 : f32 to vector<32x1xf32>
      %c0_14 = arith.constant 0 : index
      %c0_15 = arith.constant 0 : index
      %33 = vector.load %arg7[%c0_14, %c0_15] : memref<32x1xf32, #tpu.memory_space<vmem>>, vector<32x1xf32>
      tpu.vector_store %arg7[%c0_14, %c0_15], %32 {strides = array<i32>} : memref<32x1xf32, #tpu.memory_space<vmem>>, vector<32x1xf32>,
    } else {
    }
    %c0 = arith.constant 0 : index
    %c0_1 = arith.constant 0 : index
    %3 = vector.load %arg3[%c0, %c0_1] : memref<256x256xbf16, #tpu.memory_space<vmem>>, vector<256x256xbf16>
    %c0_2 = arith.constant 0 : index
    %c0_3 = arith.constant 0 : index
    %c0_4 = arith.constant 0 : index
    %4 = vector.load %arg2[%c0_2, %c0_3, %c0_4] : memref<1x256x128xbf16, #tpu.memory_space<vmem>>, vector<1x256x128xbf16>
    %5 = vector.shape_cast %4 : vector<1x256x128xbf16> to vector<256x128xbf16>
    %cst = arith.constant dense<0.000000e+00> : vector<256x128xf32>
    %6 = tpu.matmul %3, %5, %cst {dimension_numbers = #tpu.dot_dimension_numbers<[1], [0], [0], [1], [0, 0, 1, 1], [], []>} : vector<256x256xbf16>, vector<256x128xbf16>, vector<256x128xf32> -> vector<256x128xf32>
    %cst_5 = arith.constant 0.000000e+00 : f32
    %7 = vector.broadcast %cst_5 : f32 to vector<256x128xf32>
    %8 = arith.maximumf %6, %7 : vector<256x128xf32>
    %9 = vector.extract_strided_slice %8 {offsets = [0, 0], sizes = [32, 128], strides = [1, 1]} : vector<256x128xf32> to vector<32x128xf32>
    %10 = vector.extract_strided_slice %8 {offsets = [32, 0], sizes = [32, 128], strides = [1, 1]} : vector<256x128xf32> to vector<32x128xf32>
    %11 = arith.addf %9, %10 : vector<32x128xf32>
    %12 = vector.extract_strided_slice %8 {offsets = [64, 0], sizes = [32, 128], strides = [1, 1]} : vector<256x128xf32> to vector<32x128xf32>
    %13 = arith.addf %11, %12 : vector<32x128xf32>
    %14 = vector.extract_strided_slice %8 {offsets = [96, 0], sizes = [32, 128], strides = [1, 1]} : vector<256x128xf32> to vector<32x128xf32>
    %15 = arith.addf %13, %14 : vector<32x128xf32>
    %16 = vector.extract_strided_slice %8 {offsets = [128, 0], sizes = [32, 128], strides = [1, 1]} : vector<256x128xf32> to vector<32x128xf32>
    %17 = arith.addf %15, %16 : vector<32x128xf32>
    %18 = vector.extract_strided_slice %8 {offsets = [160, 0], sizes = [32, 128], strides = [1, 1]} : vector<256x128xf32> to vector<32x128xf32>
    %19 = arith.addf %17, %18 : vector<32x128xf32>
    %20 = vector.extract_strided_slice %8 {offsets = [192, 0], sizes = [32, 128], strides = [1, 1]} : vector<256x128xf32> to vector<32x128xf32>
    %21 = arith.addf %19, %20 : vector<32x128xf32>
    %22 = vector.extract_strided_slice %8 {offsets = [224, 0], sizes = [32, 128], strides = [1, 1]} : vector<256x128xf32> to vector<32x128xf32>
    %23 = arith.addf %21, %22 : vector<32x128xf32>
    %24 = vector.shape_cast %23 : vector<32x128xf32> to vector<32x1x128xf32>
    %cst_6 = arith.constant dense<0.000000e+00> : vector<32x1xf32>
    %25 = vector.multi_reduction <add>, %24, %cst_6 [2] : vector<32x1x128xf32> to vector<32x1xf32>
    %c0_7 = arith.constant 0 : index
    %c0_8 = arith.constant 0 : index
    %26 = vector.load %arg7[%c0_7, %c0_8] : memref<32x1xf32, #tpu.memory_space<vmem>>, vector<32x1xf32>
    %27 = arith.addf %26, %25 : vector<32x1xf32>
    %c0_9 = arith.constant 0 : index
    %c0_10 = arith.constant 0 : index
    %28 = vector.load %arg7[%c0_9, %c0_10] : memref<32x1xf32, #tpu.memory_space<vmem>>, vector<32x1xf32>
    tpu.vector_store %arg7[%c0_9, %c0_10], %27 {strides = array<i32>} : memref<32x1xf32, #tpu.memory_space<vmem>>, vector<32x1xf32>,
    %c0_i32_11 = arith.constant 0 : i32
    %29 = arith.cmpi eq, %arg1, %c0_i32_11 : i32
    %30 = arith.extui %29 : i1 to i32
    %c0_i32_12 = arith.constant 0 : i32
    %31 = arith.cmpi ne, %30, %c0_i32_12 : i32
    scf.if %31 {
      %c0_13 = arith.constant 0 : index
      %c0_14 = arith.constant 0 : index
      %32 = vector.load %arg7[%c0_13, %c0_14] : memref<32x1xf32, #tpu.memory_space<vmem>>, vector<32x1xf32>
      %c0_15 = arith.constant 0 : index
      %c0_16 = arith.constant 0 : index
      %33 = vector.load %arg4[%c0_15, %c0_16] : memref<32x1xf32, #tpu.memory_space<vmem>>, vector<32x1xf32>
      %34 = arith.mulf %32, %33 : vector<32x1xf32>
      %cst_17 = arith.constant dense<0.000000e+00> : vector<1xf32>
      %35 = vector.multi_reduction <add>, %34, %cst_17 [0] : vector<32x1xf32> to vector<1xf32>
      %36 = vector.shape_cast %35 : vector<1xf32> to vector<1x1xf32>
      %cst_18 = arith.constant 3.906250e-03 : f32
      %37 = vector.broadcast %cst_18 : f32 to vector<1x1xf32>
      %38 = arith.mulf %36, %37 : vector<1x1xf32>
      %c0_19 = arith.constant 0 : index
      %c0_20 = arith.constant 0 : index
      %39 = vector.load %arg5[%c0_19, %c0_20] : memref<1x1xf32, #tpu.memory_space<vmem>>, vector<1x1xf32>
      %40 = arith.addf %38, %39 : vector<1x1xf32>
      %c0_21 = arith.constant 0 : index
      %c0_22 = arith.constant 0 : index
      %c0_23 = arith.constant 0 : index
      %41 = vector.load %arg6[%c0_21, %c0_22, %c0_23] : memref<1x1x1xf32, #tpu.memory_space<vmem>>, vector<1x1x1xf32>
      %42 = vector.shape_cast %41 : vector<1x1x1xf32> to vector<1x1xf32>
      %43 = vector.shape_cast %40 : vector<1x1xf32> to vector<1x1x1xf32>
      tpu.vector_store %arg6[%c0_21, %c0_22, %c0_23], %43 {strides = array<i32>} : memref<1x1x1xf32, #tpu.memory_space<vmem>>, vector<1x1x1xf32>,
    } else {
    }
    return
  }
  func.func @transform_0(%arg0: i32, %arg1: i32) -> (i32, i32, i32) {
    %c1_i32 = arith.constant 1 : i32
    %0 = arith.muli %arg0, %c1_i32 : i32
    %1 = arith.addi %0, %arg1 : i32
    %c0_i32 = arith.constant 0 : i32
    %c0_i32_0 = arith.constant 0 : i32
    %c0_i32_1 = arith.constant 0 : i32
    return %1, %c0_i32, %c0_i32_0 : i32, i32, i32
  }
  func.func @transform_1(%arg0: i32, %arg1: i32) -> (i32, i32) {
    %c0_i32 = arith.constant 0 : i32
    %c0_i32_0 = arith.constant 0 : i32
    %c0_i32_1 = arith.constant 0 : i32
    return %c0_i32, %c0_i32_0 : i32, i32
  }
  func.func @transform_2(%arg0: i32, %arg1: i32) -> (i32, i32) {
    %c0_i32 = arith.constant 0 : i32
    %c0_i32_0 = arith.constant 0 : i32
    %c0_i32_1 = arith.constant 0 : i32
    return %c0_i32, %c0_i32_0 : i32, i32
  }
  func.func @transform_3(%arg0: i32, %arg1: i32) -> (i32, i32) {
    %c0_i32 = arith.constant 0 : i32
    %c0_i32_0 = arith.constant 0 : i32
    %c0_i32_1 = arith.constant 0 : i32
    return %c0_i32, %c0_i32_0 : i32, i32
  }
  func.func @transform_4(%arg0: i32, %arg1: i32) -> (i32, i32, i32) {
    %c0_i32 = arith.constant 0 : i32
    %c0_i32_0 = arith.constant 0 : i32
    %c0_i32_1 = arith.constant 0 : i32
    return %arg0, %c0_i32, %c0_i32_0 : i32, i32, i32
  }
}

</mosaic_0001>

<bundles_post_ra>
// kernel: _iqa_forward.1
= control target key start
LH: loop header
LB: loop body
LE: loop exit
PB: predicated region body
PF: predicated region fallthrough
CT: control target
= control target key end

     0   :  { %s1625_s17 = smov 0   ;;  %s1627_s18 = smov 0   ;;  %s1937_s0 = inlined_call_operand.vmem [shape: bf16[2,256,128], index: 0, kind: input, shape index: {}]   ;;  %s1938_s1 = inlined_call_operand.vmem [shape: bf16[256,256], index: 1, kind: input, shape index: {}]   ;;  %s1939_s2 = inlined_call_operand.vmem [shape: f32[32,1], index: 2, kind: input, shape index: {}]   ;;  %s1940_s3 = inlined_call_operand.<no memory space> [shape: f32[1,1], index: 3, kind: input, shape index: {}]   ;;  %s1941_s4 = inlined_call_operand.vmem [shape: f32[2,1,1], index: 4, kind: output, shape index: {}]  }
   0x1   :  { %v9_v0 = vstv %s1940_s3  ;;  %s1629_s19 = smov 0  }
   0x2   :  { %10 = vst [vmem:[#allocation3] sm:$0x1] %v9_v0 }
   0x3 LB: > { %s28_s3 = sadd.s32 1, %s1589_s18  ;;  %p1299_p0 = scmp.ge.s32.totalorder %s1593_s19, 1  ;;  %s1593_s19 = sphi %s1629_s19, %s16_s19   ;;  %s1589_s18 = sphi %s1627_s18, %s1943_s18   ;;  %s1585_s17 = sphi %s1625_s17, %s1942_s17  }
   0x4   : > { %p30_p1 = scmp.ge.s32.totalorder %s28_s3, 2  ;;  %p180_p2 = scmp.lt.s32.totalorder %s1593_s19, 3 }
   0x6   : > { %s1945_s3 = smov (%p30_p1, %s28_s3), 0  ;;  %p181_p3 = pnand %p1299_p0, %p180_p2 }
   0x7   : > { %p206_p4 = scmp.lt.s32.totalorder (!%p181_p3), %s1585_s17, 1 }
   0x8   : > { %184 = sbr.rel (%p181_p3) target bundleno = 546 (0x222), region = 36 }
   0xd   : > { %v1525_v1 = vld [vmem:[%s1938_s1 + $0x4] ss:$8 sps:$4 sm:$0xff]   ;;  %s1947_s17 = smov (!%p206_p4, %s1585_s17), 1  ;;  %v1523_v19 = vld [vmem:[%s1938_s1] ss:$8 sps:$4 sm:$0xff]   ;;  %vm998_vm0 = vcmask 1040384  }
   0xe   : > { %v1528_v2 = vld [vmem:[%s1938_s1 + $0x84] ss:$8 sps:$4 sm:$0xff]   ;;  %577 = vmatprep.mubr.bf16.mxu0 %v1525_v1  ;;  %s1352_s24 = sshll.u32 %s1947_s17, 7  ;;  %v1526_v20 = vld [vmem:[%s1938_s1 + $0x80] ss:$8 sps:$4 sm:$0xff]   ;;  %vm220_vm1 = vcmask 7168   ;;  %s214_s29 = scalar_lea.vmem %s1941_s4, %s1947_s17 }
   0xf   : > { %641 = vmatprep.mubr.bf16.mxu1 %v1528_v2  ;;  %s1655_s27 = scalar_lea.vmem %s1937_s0, %s1352_s24  ;;  %v1529_v21 = vld [vmem:[%s1938_s1 + $0x14] ss:$8 sps:$4 sm:$0xff]   ;;  %v1531_v23 = vld [vmem:[%s1938_s1 + $0x10] ss:$8 sps:$4 sm:$0xff]   ;;  %v1535_v25 = vld [vmem:[%s1938_s1 + $0x24] ss:$8 sps:$4 sm:$0xff]  }
  0x10   : > { %v1507_v3 = vld [vmem:[%s1655_s27 + $0x78] sm:$0xff]   ;;  %v1509_v5 = vld [vmem:[%s1655_s27 + $0x70] sm:$0xff]   ;;  %v1511_v7 = vld [vmem:[%s1655_s27 + $0x68] sm:$0xff]   ;;  %vm1132_vm2 = vcmask 1041409   ;;  %vm1135_vm3 = vcmask 1042434   ;;  %vm1138_vm4 = vcmask 1043459  }
  0x11   : > { %v1508_v4 = vld [vmem:[%s1655_s27 + $0x38] sm:$0xff]   ;;  %1353 = vmatprep.subr.bf16.mxu0 %v1507_v3  ;;  %1465 = vmatprep.subr.bf16.mxu1 %v1507_v3  ;;  %v1510_v6 = vld [vmem:[%s1655_s27 + $0x30] sm:$0xff]   ;;  %v1512_v8 = vld [vmem:[%s1655_s27 + $0x28] sm:$0xff]   ;;  %vm1141_vm5 = vcmask 1044484   ;;  %vm1144_vm6 = vcmask 1045509   ;;  %vm1147_vm7 = vcmask 1046534  }
  0x12   : > { %1354 = vmatpush3.bf16.msra.mxu0 %v1508_v4  ;;  %1473 = vmatpush3.bf16.msra.mxu1 %v1508_v4  ;;  %v1513_v9 = vld [vmem:[%s1655_s27 + $0x60] sm:$0xff]   ;;  %v1515_v11 = vld [vmem:[%s1655_s27 + $0x58] sm:$0xff]   ;;  %v1517_v13 = vld [vmem:[%s1655_s27 + $0x50] sm:$0xff]   ;;  %vm1150_vm8 = vcmask 1047559   ;;  %vm1238_vm9 = vcmask 0  }
  0x13   : > { %1355 = vmatprep.subr.bf16.mxu0 %v1509_v5  ;;  %1466 = vmatprep.subr.bf16.mxu1 %v1509_v5  ;;  %v1514_v10 = vld [vmem:[%s1655_s27 + $0x20] sm:$0xff]   ;;  %v1516_v12 = vld [vmem:[%s1655_s27 + $0x18] sm:$0xff]   ;;  %v1518_v14 = vld [vmem:[%s1655_s27 + $0x10] sm:$0xff]  }
  0x14   : > { %v1519_v15 = vld [vmem:[%s1655_s27 + $0x48] sm:$0xff]   ;;  %v1521_v17 = vld [vmem:[%s1655_s27 + $0x40] sm:$0xff]   ;;  %v1532_v22 = vld [vmem:[%s1938_s1 + $0x94] ss:$8 sps:$4 sm:$0xff]  }
  0x15   : > { %v1520_v16 = vld [vmem:[%s1655_s27 + $0x8] sm:$0xff]   ;;  %v1522_v18 = vld [vmem:[%s1655_s27] sm:$0xff]   ;;  %v1534_v24 = vld [vmem:[%s1938_s1 + $0x90] ss:$8 sps:$4 sm:$0xff]  }
  0x16   : > { %1356 = vmatpush3.bf16.msra.mxu0 %v1510_v6  ;;  %1474 = vmatpush3.bf16.msra.mxu1 %v1510_v6  ;;  %v1538_v26 = vld [vmem:[%s1938_s1 + $0xa4] ss:$8 sps:$4 sm:$0xff]   ;;  %v1537_v27 = vld [vmem:[%s1938_s1 + $0x20] ss:$8 sps:$4 sm:$0xff]   ;;  %v1541_v29 = vld [vmem:[%s1938_s1 + $0x34] ss:$8 sps:$4 sm:$0xff]  }
  0x17   : > { %1357 = vmatprep.subr.bf16.mxu0 %v1511_v7  ;;  %1467 = vmatprep.subr.bf16.mxu1 %v1511_v7  ;;  %v1540_v28 = vld [vmem:[%s1938_s1 + $0xa0] ss:$8 sps:$4 sm:$0xff]   ;;  %v1544_v30 = vld [vmem:[%s1938_s1 + $0xb4] ss:$8 sps:$4 sm:$0xff]   ;;  %v1543_v31 = vld [vmem:[%s1938_s1 + $0x30] ss:$8 sps:$4 sm:$0xff]  }
  0x18   : > { %v1546_v32 = vld [vmem:[%s1938_s1 + $0xb0] ss:$8 sps:$4 sm:$0xff]   ;;  %v1547_v33 = vld [vmem:[%s1938_s1 + $0x44] ss:$8 sps:$4 sm:$0xff]   ;;  %v1549_v35 = vld [vmem:[%s1938_s1 + $0x40] ss:$8 sps:$4 sm:$0xff]  }
  0x19   : > { %v1550_v34 = vld [vmem:[%s1938_s1 + $0xc4] ss:$8 sps:$4 sm:$0xff]   ;;  %v1552_v36 = vld [vmem:[%s1938_s1 + $0xc0] ss:$8 sps:$4 sm:$0xff]   ;;  %v1553_v37 = vld [vmem:[%s1938_s1 + $0x54] ss:$8 sps:$4 sm:$0xff]  }
  0x1a   : > { %1358 = vmatpush3.bf16.msra.mxu0 %v1512_v8  ;;  %1475 = vmatpush3.bf16.msra.mxu1 %v1512_v8  ;;  %v1556_v38 = vld [vmem:[%s1938_s1 + $0xd4] ss:$8 sps:$4 sm:$0xff]   ;;  %v1555_v39 = vld [vmem:[%s1938_s1 + $0x50] ss:$8 sps:$4 sm:$0xff]   ;;  %v1559_v41 = vld [vmem:[%s1938_s1 + $0x64] ss:$8 sps:$4 sm:$0xff]  }
  0x1b   : > { %1359 = vmatprep.subr.bf16.mxu0 %v1513_v9  ;;  %1468 = vmatprep.subr.bf16.mxu1 %v1513_v9  ;;  %v1558_v40 = vld [vmem:[%s1938_s1 + $0xd0] ss:$8 sps:$4 sm:$0xff]   ;;  %v1562_v42 = vld [vmem:[%s1938_s1 + $0xe4] ss:$8 sps:$4 sm:$0xff]   ;;  %v1561_v43 = vld [vmem:[%s1938_s1 + $0x60] ss:$8 sps:$4 sm:$0xff]  }
  0x1c   : > { %v1564_v44 = vld [vmem:[%s1938_s1 + $0xe0] ss:$8 sps:$4 sm:$0xff]   ;;  %v1565_v45 = vld [vmem:[%s1938_s1 + $0x74] ss:$8 sps:$4 sm:$0xff]   ;;  %v1567_v47 = vld [vmem:[%s1938_s1 + $0x70] ss:$8 sps:$4 sm:$0xff]  }
  0x1d   : > { %v1568_v46 = vld [vmem:[%s1938_s1 + $0xf4] ss:$8 sps:$4 sm:$0xff]   ;;  %v1570_v48 = vld [vmem:[%s1938_s1 + $0xf0] ss:$8 sps:$4 sm:$0xff]  }
  0x1e   : > { %1360 = vmatpush3.bf16.msra.mxu0 %v1514_v10  ;;  %1476 = vmatpush3.bf16.msra.mxu1 %v1514_v10 }
  0x1f   : > { %1361 = vmatprep.subr.bf16.mxu0 %v1515_v11  ;;  %1469 = vmatprep.subr.bf16.mxu1 %v1515_v11 }
  0x22   : > { %1362 = vmatpush3.bf16.msra.mxu0 %v1516_v12  ;;  %1477 = vmatpush3.bf16.msra.mxu1 %v1516_v12 }
  0x23   : > { %1363 = vmatprep.subr.bf16.mxu0 %v1517_v13  ;;  %1470 = vmatprep.subr.bf16.mxu1 %v1517_v13 }
  0x26   : > { %1364 = vmatpush3.bf16.msra.mxu0 %v1518_v14  ;;  %1478 = vmatpush3.bf16.msra.mxu1 %v1518_v14 }
  0x27   : > { %1365 = vmatprep.subr.bf16.mxu0 %v1519_v15  ;;  %1471 = vmatprep.subr.bf16.mxu1 %v1519_v15 }
  0x2a   : > { %1366 = vmatpush3.bf16.msra.mxu0 %v1520_v16  ;;  %1479 = vmatpush3.bf16.msra.mxu1 %v1520_v16 }
  0x2b   : > { %1367 = vmatprep.subr.bf16.mxu0 %v1521_v17  ;;  %1472 = vmatprep.subr.bf16.mxu1 %v1521_v17 }
  0x2e   : > { %1368 = vmatpush3.bf16.msra.mxu0 %v1522_v18  ;;  %1480 = vmatpush3.bf16.msra.mxu1 %v1522_v18 }
  0x31   : > { %578 = vmatmul.mubr.bf16.vlgmr.msra.gmra.mxu0 %v1523_v19  ;;  %642 = vmatmul.mubr.bf16.vlgmr.msra.gmra.mxu1 %v1526_v20 }
  0x32   : > { %585 = vmatprep.mubr.bf16.mxu0 %v1529_v21  ;;  %649 = vmatprep.mubr.bf16.mxu1 %v1532_v22 }
  0x39   : > { %586 = vmatmul.mubr.bf16.gmra.mxu0 %v1531_v23  ;;  %650 = vmatmul.mubr.bf16.gmra.mxu1 %v1534_v24 }
  0x3a   : > { %593 = vmatprep.mubr.bf16.mxu0 %v1535_v25  ;;  %657 = vmatprep.mubr.bf16.mxu1 %v1538_v26 }
  0x41   : > { %594 = vmatmul.mubr.bf16.gmra.mxu0 %v1537_v27  ;;  %658 = vmatmul.mubr.bf16.gmra.mxu1 %v1540_v28 }
  0x42   : > { %601 = vmatprep.mubr.bf16.mxu0 %v1541_v29  ;;  %665 = vmatprep.mubr.bf16.mxu1 %v1544_v30 }
  0x49   : > { %602 = vmatmul.mubr.bf16.gmra.mxu0 %v1543_v31  ;;  %666 = vmatmul.mubr.bf16.gmra.mxu1 %v1546_v32 }
  0x4a   : > { %609 = vmatprep.mubr.bf16.mxu0 %v1547_v33  ;;  %673 = vmatprep.mubr.bf16.mxu1 %v1550_v34 }
  0x51   : > { %610 = vmatmul.mubr.bf16.gmra.mxu0 %v1549_v35  ;;  %674 = vmatmul.mubr.bf16.gmra.mxu1 %v1552_v36 }
  0x52   : > { %617 = vmatprep.mubr.bf16.mxu0 %v1553_v37  ;;  %681 = vmatprep.mubr.bf16.mxu1 %v1556_v38 }
  0x59   : > { %618 = vmatmul.mubr.bf16.gmra.mxu0 %v1555_v39  ;;  %682 = vmatmul.mubr.bf16.gmra.mxu1 %v1558_v40  ;;  %v1595_v40 = vmov 1966171168  }
  0x5a   : > { %625 = vmatprep.mubr.bf16.mxu0 %v1559_v41  ;;  %689 = vmatprep.mubr.bf16.mxu1 %v1562_v42  ;;  %v1795_v41 = vunpack.c.l.s4 %v1595_v40 }
  0x61   : > { %626 = vmatmul.mubr.bf16.gmra.mxu0 %v1561_v43  ;;  %690 = vmatmul.mubr.bf16.gmra.mxu1 %v1564_v44 }
  0x62   : > { %633 = vmatprep.mubr.bf16.mxu0 %v1565_v45  ;;  %697 = vmatprep.mubr.bf16.mxu1 %v1568_v46  ;;  %v774_v45 = vlaneseq }
  0x69   : > { %634 = vmatmul.mubr.bf16.gmra.mxu0 %v1567_v47  ;;  %698 = vmatmul.mubr.bf16.gmra.mxu1 %v1570_v48 }
  0xf1   : > { %v1369_v49 = vpop.f32.mrf.mxu0  ;;  %v1417_v50 = vpop.f32.mrf.mxu1 }
  0xf3   : > { %v1370_v51 = vpop.f32.mrf.mxu0  ;;  %v1418_v52 = vpop.f32.mrf.mxu1 }
  0xf4   : > { %v1371_v34 = vadd.f32 %v1370_v51, %v1369_v49  ;;  %v1419_v42 = vadd.f32 %v1418_v52, %v1417_v50  ;;  %v775_v52 = vshrl.u32 %v774_v45, 7 }
  0xf5   : > { %v1372_v53 = vpop.f32.mrf.mxu0  ;;  %v1420_v54 = vpop.f32.mrf.mxu1 }
  0xf6   : > { %v706_v46 = vmax.f32 %v1371_v34, 0.0 }
  0xf7   : > { %v1373_v55 = vpop.f32.mrf.mxu0  ;;  %v1421_v56 = vpop.f32.mrf.mxu1 }
  0xf8   : > { %v1374_v47 = vadd.f32 %v1373_v55, %v1372_v53 }
  0xf9   : > { %v1375_v57 = vpop.f32.mrf.mxu0  ;;  %v1763_v58 = vpop.f32.mrf.mxu1 }
  0xfb   : > { %v1376_v59 = vpop.f32.mrf.mxu0  ;;  %v1765_v60 = vpop.f32.mrf.mxu1 }
  0xfd   : > { %v1378_v61 = vpop.f32.mrf.mxu0  ;;  %v1426_v62 = vpop.f32.mrf.mxu1 }
  0xff   : > { %v1379_v63 = vpop.f32.mrf.mxu0  ;;  %v1427_v0 = vpop.f32.mrf.mxu1 }
 0x100   : > { %v1767_v1 = vadd.f32 %v1379_v63, %v1378_v61  ;;  %v1769_v2 = vadd.f32 %v1427_v0, %v1426_v62  ;;  %v1422_v62 = vadd.f32 %v1421_v56, %v1420_v54  ;;  %v1377_v63 = vadd.f32 %v1376_v59, %v1375_v57 }
 0x101   : > { %v1381_v3 = vpop.f32.mrf.mxu0  ;;  %v1429_v4 = vpop.f32.mrf.mxu1 }
 0x102   : > { %v708_v54 = vmax.f32 %v1377_v63, 0.0 }
 0x103   : > { %v1382_v5 = vpop.f32.mrf.mxu0  ;;  %v1430_v6 = vpop.f32.mrf.mxu1 }
 0x104   : > { %v1383_v31 = vadd.f32 %v1382_v5, %v1381_v3 }
 0x105   : > { %v1384_v7 = vpop.f32.mrf.mxu0  ;;  %v1771_v8 = vpop.f32.mrf.mxu1 }
 0x106   : > { %v710_v38 = vmax.f32 %v1383_v31, 0.0  ;;  %v707_v31 = vmax.f32 %v1374_v47, 0.0 }
 0x107   : > { %v1385_v9 = vpop.f32.mrf.mxu0  ;;  %v1773_v10 = vpop.f32.mrf.mxu1 }
 0x108   : > { %v1386_v39 = vadd.f32 %v1385_v9, %v1384_v7  ;;  %v738_v0 = vadd.f32 %v710_v38, %v706_v46  ;;  %v773_v7 = vunpack.c.0.s8 %v1795_v41  ;;  %v722_v9 = vmax.f32 %v1419_v42, 0.0 }
 0x109   : > { %v1387_v11 = vpop.f32.mrf.mxu0  ;;  %v1775_v12 = vpop.f32.mrf.mxu1 }
 0x10a   : > { %v711_v3 = vmax.f32 %v1386_v39, 0.0 }
 0x10b   : > { %v1388_v13 = vpop.f32.mrf.mxu0  ;;  %v1777_v14 = vpop.f32.mrf.mxu1 }
 0x10d   : > { %v1390_v15 = vpop.f32.mrf.mxu0  ;;  %v1779_v16 = vpop.f32.mrf.mxu1 }
 0x10f   : > { %v1391_v17 = vpop.f32.mrf.mxu0  ;;  %v1781_v18 = vpop.f32.mrf.mxu1 }
 0x110   : > { %v1392_v56 = vadd.f32 %v1391_v17, %v1390_v15  ;;  %v709_v15 = vmax.f32 %v1767_v1, 0.0  ;;  %v1425_v1 = vadd.f32 %v1765_v60, %v1763_v58  ;;  %v725_v60 = vmax.f32 %v1769_v2, 0.0 }
 0x111   : > { %v1393_v19 = vpop.f32.mrf.mxu0  ;;  %v1441_v20 = vpop.f32.mrf.mxu1 }
 0x112   : > { %v713_v17 = vmax.f32 %v1392_v56, 0.0  ;;  %v724_v58 = vmax.f32 %v1425_v1, 0.0 }
 0x113   : > { %v1394_v21 = vpop.f32.mrf.mxu0  ;;  %v1442_v22 = vpop.f32.mrf.mxu1 }
 0x114   : > { %v1395_v35 = vadd.f32 %v1394_v21, %v1393_v19  ;;  %v1431_v19 = vadd.f32 %v1430_v6, %v1429_v4  ;;  %v1389_v21 = vadd.f32 %v1388_v13, %v1387_v11  ;;  %v1443_v57 = vadd.f32 %v1442_v22, %v1441_v20 }
 0x115   : > { %v1396_v23 = vpop.f32.mrf.mxu0  ;;  %v1783_v24 = vpop.f32.mrf.mxu1  ;;  %v1434_v4 = vadd.f32 %v1773_v10, %v1771_v8 }
 0x116   : > { %v714_v48 = vmax.f32 %v1395_v35, 0.0  ;;  %v726_v41 = vmax.f32 %v1431_v19, 0.0  ;;  %v712_v6 = vmax.f32 %v1389_v21, 0.0  ;;  %v730_v20 = vmax.f32 %v1443_v57, 0.0 }
 0x117   : > { %v1397_v25 = vpop.f32.mrf.mxu0  ;;  %v1785_v26 = vpop.f32.mrf.mxu1  ;;  %v727_v10 = vmax.f32 %v1434_v4, 0.0 }
 0x118   : > { %v1398_v61 = vadd.f32 %v1397_v25, %v1396_v23  ;;  %v742_v40 = vadd.f32 %v738_v0, %v714_v48  ;;  %v723_v23 = vmax.f32 %v1422_v62, 0.0  ;;  %v739_v25 = vadd.f32 %v711_v3, %v707_v31 }
 0x119   : > { %v1399_v27 = vpop.f32.mrf.mxu0  ;;  %v1787_v28 = vpop.f32.mrf.mxu1  ;;  %v1446_v22 = vadd.f32 %v1785_v26, %v1783_v24  ;;  %v741_v3 = vadd.f32 %v713_v17, %v709_v15  ;;  %v1805_v26 = vsub.s32 %v773_v7, %v775_v52  ;;  %v1437_v52 = vadd.f32 %v1777_v14, %v1775_v12 }
 0x11a   : > { %v715_v34 = vmax.f32 %v1398_v61, 0.0 }
 0x11b   : > { %v1400_v29 = vpop.f32.mrf.mxu0  ;;  %v1789_v30 = vpop.f32.mrf.mxu1 }
 0x11c   : > { %v1401_v35 = vadd.f32 %v1400_v29, %v1399_v27  ;;  %v743_v42 = vadd.f32 %v739_v25, %v715_v34  ;;  %v1449_v12 = vadd.f32 %v1789_v30, %v1787_v28 }
 0x11d   : > { %v1402_v32 = vpop.f32.mrf.mxu0  ;;  %v1791_v33 = vpop.f32.mrf.mxu1 }
 0x11e   : > { %v716_v29 = vmax.f32 %v1401_v35, 0.0  ;;  %v732_v17 = vmax.f32 %v1449_v12, 0.0 }
 0x11f   : > { %v1403_v36 = vpop.f32.mrf.mxu0  ;;  %v1793_v37 = vpop.f32.mrf.mxu1 }
 0x120   : > { %v1404_v11 = vadd.f32 %v1403_v36, %v1402_v32  ;;  %v740_v32 = vadd.f32 %v712_v6, %v708_v54 }
 0x121   : > { %v1405_v43 = vpop.f32.mrf.mxu0  ;;  %v1453_v44 = vpop.f32.mrf.mxu1 }
 0x122   : > { %v717_v36 = vmax.f32 %v1404_v11, 0.0 }
 0x123   : > { %v1406_v49 = vpop.f32.mrf.mxu0  ;;  %v1454_v51 = vpop.f32.mrf.mxu1 }
 0x124   : > { %v1407_v5 = vadd.f32 %v1406_v49, %v1405_v43  ;;  %v1455_v45 = vadd.f32 %v1454_v51, %v1453_v44  ;;  %v745_v31 = vadd.f32 %v741_v3, %v717_v36 }
 0x125   : > { %v1408_v50 = vpop.f32.mrf.mxu0  ;;  %v1456_v55 = vpop.f32.mrf.mxu1 }
 0x126   : > { %v718_v53 = vmax.f32 %v1407_v5, 0.0  ;;  %v734_v44 = vmax.f32 %v1455_v45, 0.0  ;;  %v731_v5 = vmax.f32 %v1446_v22, 0.0 }
 0x127   : > { %v1409_v59 = vpop.f32.mrf.mxu0  ;;  %v1457_v47 = vpop.f32.mrf.mxu1 }
 0x128   : > { %v746_v38 = vadd.f32 %v742_v40, %v718_v53  ;;  %v1410_v39 = vadd.f32 %v1409_v59, %v1408_v50  ;;  %v1458_v62 = vadd.f32 %v1457_v47, %v1456_v55 }
 0x129   : > { %v1411_v13 = vpop.f32.mrf.mxu0 }
 0x12a   : > { %v750_v43 = vadd.f32 %v746_v38, %v722_v9  ;;  %v719_v46 = vmax.f32 %v1410_v39, 0.0  ;;  %v744_v9 = vadd.f32 %v740_v32, %v716_v29  ;;  %v735_v40 = vmax.f32 %v1458_v62, 0.0 }
 0x12b   : > { %v1412_v27 = vpop.f32.mrf.mxu0 }
 0x12c   : > { %v754_v48 = vadd.f32 %v750_v43, %v726_v41  ;;  %v747_v61 = vadd.f32 %v743_v42, %v719_v46  ;;  %v1413_v8 = vadd.f32 %v1412_v27, %v1411_v13  ;;  %v728_v13 = vmax.f32 %v1437_v52, 0.0 }
 0x12d   : > { %v1414_v63 = vpop.f32.mrf.mxu0 }
 0x12e   : > { %v758_v49 = vadd.f32 %v754_v48, %v730_v20  ;;  %v751_v51 = vadd.f32 %v747_v61, %v723_v23  ;;  %v720_v0 = vmax.f32 %v1413_v8, 0.0  ;;  %v1459_v23 = vpop.f32.mrf.mxu1 }
 0x12f   : > { %v1415_v24 = vpop.f32.mrf.mxu0 }
 0x130   : > { %v762_v19 = vadd.f32 %v758_v49, %v734_v44  ;;  %v755_v21 = vadd.f32 %v751_v51, %v727_v10  ;;  %v1416_v50 = vadd.f32 %v1415_v24, %v1414_v63  ;;  %v748_v55 = vadd.f32 %v744_v9, %v720_v0  ;;  %v1460_v41 = vpop.f32.mrf.mxu1 }
 0x131   : > { %v1461_v43 = vadd.f32 %v1460_v41, %v1459_v23  ;;  %v1440_v49 = vadd.f32 %v1781_v18, %v1779_v16 }
 0x132   : > { %v770_v34 = vcombine.high %v762_v19, %v762_v19  ;;  %v759_v53 = vadd.f32 %v755_v21, %v731_v5  ;;  %v721_v54 = vmax.f32 %v1416_v50, 0.0  ;;  %v777_v56 = vrot.slane %v762_v19, %v1805_v26  ;;  %v1462_v36 = vpop.f32.mrf.mxu1 }
 0x133   : > { %v752_v38 = vadd.f32 %v748_v55, %v724_v58  ;;  %v736_v29 = vmax.f32 %v1461_v43, 0.0  ;;  %v729_v9 = vmax.f32 %v1440_v49, 0.0  ;;  %v1452_v19 = vadd.f32 %v1793_v37, %v1791_v33 }
 0x134   : > { %v763_v57 = vadd.f32 %v759_v53, %v735_v40  ;;  %v749_v7 = vadd.f32 %v745_v31, %v721_v54  ;;  %v793_v59 = vrot.slane %v777_v56, %v1805_v26  ;;  %v785_v25 = vcombine.high %v777_v56, %v777_v56  ;;  %v1463_v1 = vpop.f32.mrf.mxu1 }
 0x135   : > { %v784_v35 = vrot.slane %v770_v34, %v1805_v26  ;;  %v756_v45 = vadd.f32 %v752_v38, %v728_v13  ;;  %v1464_v16 = vadd.f32 %v1463_v1, %v1462_v36  ;;  %v733_v34 = vmax.f32 %v1452_v19, 0.0 }
 0x136   : > { %v753_v39 = vadd.f32 %v749_v7, %v725_v60  ;;  %v999_v4 = vsel %vm998_vm0, %v793_v59, 0.0  ;;  %v815_v6 = vcombine.high %v793_v59, %v793_v59  ;;  %v807_v11 = vrot.slane %v785_v25, %v1805_v26 }
 0x137   : > { %v826_v2 = vrot.slane %v763_v57, %v1805_v26  ;;  %1000 = vadd.xlane.f32.xlu0 %v999_v4  ;;  %v800_v42 = vrot.slane %v784_v35, %v1805_v26  ;;  %v786_v15 = vcombine.high %v784_v35, %v784_v35  ;;  %v819_v27 = vcombine.high %v763_v57, %v763_v57 }
 0x138   : > { %v1005_v14 = vsel %vm998_vm0, %v815_v6, 0.0  ;;  %v1002_v46 = vsel %vm998_vm0, %v807_v11, 0.0  ;;  %v817_v22 = vcombine.high %v807_v11, %v807_v11  ;;  %v760_v28 = vadd.f32 %v756_v45, %v732_v17 }
 0x139   : > { %1006 = vadd.xlane.f32.xlu1 %v1005_v14  ;;  %v842_v47 = vrot.slane %v826_v2, %v1805_v26  ;;  %v1011_v20 = vsel %vm998_vm0, %v800_v42, 0.0  ;;  %v814_v48 = vrot.slane %v786_v15, %v1805_v26  ;;  %v834_v61 = vcombine.high %v826_v2, %v826_v2 }
 0x13a   : > { %v1008_v8 = vsel %vm998_vm0, %v817_v22, 0.0  ;;  %v816_v10 = vcombine.high %v800_v42, %v800_v42  ;;  %v764_v32 = vadd.f32 %v760_v28, %v736_v29  ;;  %v833_v44 = vrot.slane %v819_v27, %v1805_v26 }
 0x13b   : > { %1003 = vadd.xlane.f32.xlu0 %v1002_v46  ;;  %v1023_v30 = vsel %vm998_vm0, %v842_v47, 0.0  ;;  %v1014_v62 = vsel %vm998_vm0, %v814_v48, 0.0  ;;  %v856_v63 = vrot.slane %v834_v61, %v1805_v26  ;;  %v864_v0 = vcombine.high %v842_v47, %v842_v47 }
 0x13c   : > { %v1017_v51 = vsel %vm998_vm0, %v816_v10, 0.0  ;;  %v849_v5 = vrot.slane %v833_v44, %v1805_v26  ;;  %v875_v24 = vrot.slane %v764_v32, %v1805_v26  ;;  %v818_v50 = vcombine.high %v814_v48, %v814_v48 }
 0x13d   : > { %1012 = vadd.xlane.f32.xlu1 %v1011_v20  ;;  %v1026_v3 = vsel %vm998_vm0, %v856_v63, 0.0  ;;  %v1029_v21 = vsel %vm998_vm0, %v864_v0, 0.0  ;;  %v757_v18 = vadd.f32 %v753_v39, %v729_v9  ;;  %v866_v55 = vcombine.high %v856_v63, %v856_v63 }
 0x13e   : > { %v1035_v31 = vsel %vm998_vm0, %v849_v5, 0.0  ;;  %v891_v40 = vrot.slane %v875_v24, %v1805_v26  ;;  %v1020_v53 = vsel %vm998_vm0, %v818_v50, 0.0  ;;  %v835_v54 = vcombine.high %v833_v44, %v833_v44 }
 0x13f   : > { %1024 = vadd.xlane.f32.xlu0 %v1023_v30  ;;  %v737_v23 = vmax.f32 %v1464_v16, 0.0  ;;  %v761_v56 = vadd.f32 %v757_v18, %v733_v34  ;;  %v865_v37 = vcombine.high %v849_v5, %v849_v5  ;;  %v883_v58 = vcombine.high %v875_v24, %v875_v24 }
 0x140   : > { %v1047_v33 = vsel %vm998_vm0, %v891_v40, 0.0  ;;  %v868_v60 = vcombine.high %v764_v32, %v764_v32  ;;  %v1032_v57 = vsel %vm998_vm0, %v866_v55, 0.0  ;;  %v863_v7 = vrot.slane %v835_v54, %v1805_v26 }
 0x141   : > { %1009 = vadd.xlane.f32.xlu1 %v1008_v8  ;;  %v765_v52 = vadd.f32 %v761_v56, %v737_v23  ;;  %v1041_v59 = vsel %vm998_vm0, %v865_v37, 0.0  ;;  %v905_v25 = vrot.slane %v883_v58, %v1805_v26  ;;  %v913_v38 = vcombine.high %v891_v40, %v891_v40 }
 0x142   : > { %v1038_v35 = vsel %vm998_vm0, %v863_v7, 0.0  ;;  %v882_v39 = vrot.slane %v868_v60, %v1805_v26  ;;  %v867_v4 = vcombine.high %v863_v7, %v863_v7  ;;  %v1596_v11 = vmov 0.0  }
 0x143   : > { %1015 = vadd.xlane.f32.xlu0 %v1014_v62  ;;  %v1050_v41 = vsel %vm998_vm0, %v905_v25, 0.0  ;;  %v924_v6 = vrot.slane %v765_v52, %v1805_v26  ;;  %221 = vst.msk [vmem:[#allocation2] sm:$0xff] %vm220_vm1, %v1596_v11  ;;  %222 = vst.msk [vmem:[#allocation2 + $0x8] sm:$0xff] %vm220_vm1, %v1596_v11  ;;  %v1053_v2 = vsel %vm998_vm0, %v913_v38, 0.0  ;;  %v917_v42 = vcombine.high %v765_v52, %v765_v52 }
 0x144   : > { %223 = vst.msk [vmem:[#allocation2 + $0x10] sm:$0xff] %vm220_vm1, %v1596_v11  ;;  %224 = vst.msk [vmem:[#allocation2 + $0x18] sm:$0xff] %vm220_vm1, %v1596_v11  ;;  %v898_v13 = vrot.slane %v882_v39, %v1805_v26  ;;  %v1044_v12 = vsel %vm998_vm0, %v867_v4, 0.0  ;;  %v915_v45 = vcombine.high %v905_v25, %v905_v25  ;;  %v884_v46 = vcombine.high %v882_v39, %v882_v39 }
 0x145   : > { %1018 = vadd.xlane.f32.xlu1 %v1017_v51  ;;  %v940_v14 = vrot.slane %v924_v6, %v1805_v26  ;;  %v932_v17 = vcombine.high %v924_v6, %v924_v6  ;;  %v931_v27 = vrot.slane %v917_v42, %v1805_v26 }
 0x146   : > { %v1059_v43 = vsel %vm998_vm0, %v898_v13, 0.0  ;;  %v914_v15 = vcombine.high %v898_v13, %v898_v13  ;;  %v1056_v20 = vsel %vm998_vm0, %v915_v45, 0.0  ;;  %v912_v22 = vrot.slane %v884_v46, %v1805_v26 }
 0x147   : > { %1027 = vadd.xlane.f32.xlu0 %v1026_v3  ;;  %v1071_v47 = vsel %vm998_vm0, %v940_v14, 0.0  ;;  %v954_v28 = vrot.slane %v932_v17, %v1805_v26  ;;  %v947_v48 = vrot.slane %v931_v27, %v1805_v26  ;;  %v962_v8 = vcombine.high %v940_v14, %v940_v14 }
 0x148   : > { %v1065_v29 = vsel %vm998_vm0, %v914_v15, 0.0  ;;  %v1062_v30 = vsel %vm998_vm0, %v912_v22, 0.0  ;;  %v933_v36 = vcombine.high %v931_v27, %v931_v27  ;;  %v916_v63 = vcombine.high %v912_v22, %v912_v22 }
 0x149   : > { %1030 = vadd.xlane.f32.xlu1 %v1029_v21  ;;  %v1074_v61 = vsel %vm998_vm0, %v954_v28, 0.0  ;;  %v1083_v10 = vsel %vm998_vm0, %v947_v48, 0.0  ;;  %v964_v32 = vcombine.high %v954_v28, %v954_v28  ;;  %v1077_v62 = vsel %vm998_vm0, %v962_v8, 0.0 }
 0x14a   : > { %v961_v49 = vrot.slane %v933_v36, %v1805_v26  ;;  %v1068_v51 = vsel %vm998_vm0, %v916_v63, 0.0  ;;  %v963_v0 = vcombine.high %v947_v48, %v947_v48  ;;  %v1096_v28 = vld [vmem:[#allocation2 + $0x8] sm:$0xff] }
 0x14b   : > { %1036 = vadd.xlane.f32.xlu0 %v1035_v31  ;;  %v1080_v44 = vsel %vm998_vm0, %v964_v32, 0.0 }
 0x14c   : > { %v1086_v1 = vsel %vm998_vm0, %v961_v49, 0.0  ;;  %v965_v3 = vcombine.high %v961_v49, %v961_v49  ;;  %v1089_v5 = vsel %vm998_vm0, %v963_v0, 0.0 }
 0x14d   : > { %1021 = vadd.xlane.f32.xlu1 %v1020_v53 }
 0x14e   : > { %v1092_v24 = vsel %vm998_vm0, %v965_v3, 0.0 }
 0x14f   : > { %1048 = vadd.xlane.f32.xlu0 %v1047_v33 }
 0x151   : > { %1033 = vadd.xlane.f32.xlu1 %v1032_v57 }
 0x153   : > { %1042 = vadd.xlane.f32.xlu0 %v1041_v59 }
 0x155   : > { %1039 = vadd.xlane.f32.xlu1 %v1038_v35  ;;  %v1095_v35 = vld [vmem:[#allocation2] sm:$0xff] }
 0x157   : > { %1051 = vadd.xlane.f32.xlu0 %v1050_v41 }
 0x159   : > { %1054 = vadd.xlane.f32.xlu1 %v1053_v2 }
 0x15b   : > { %1045 = vadd.xlane.f32.xlu0 %v1044_v12 }
 0x15d   : > { %1060 = vadd.xlane.f32.xlu1 %v1059_v43 }
 0x15f   : > { %1072 = vadd.xlane.f32.xlu0 %v1071_v47 }
 0x161   : > { %1057 = vadd.xlane.f32.xlu1 %v1056_v20 }
 0x163   : > { %1066 = vadd.xlane.f32.xlu0 %v1065_v29 }
 0x165   : > { %1063 = vadd.xlane.f32.xlu1 %v1062_v30 }
 0x167   : > { %1075 = vadd.xlane.f32.xlu0 %v1074_v61 }
 0x169   : > { %1084 = vadd.xlane.f32.xlu1 %v1083_v10 }
 0x16b   : > { %1078 = vadd.xlane.f32.xlu0 %v1077_v62 }
 0x16d   : > { %1081 = vadd.xlane.f32.xlu1 %v1080_v44 }
 0x16f   : > { %1069 = vadd.xlane.f32.xlu0 %v1068_v51 }
 0x171   : > { %1087 = vadd.xlane.f32.xlu1 %v1086_v1 }
 0x173   : > { %1090 = vadd.xlane.f32.xlu0 %v1089_v5 }
 0x175   : > { %1093 = vadd.xlane.f32.xlu1 %v1092_v24 }
 0x1c0   : > { %v1001_v9 = vpop.xlane.xlu0 %1000 }
 0x1c2   : > { %v1007_v19 = vpop.xlane.xlu1 %1006 }
 0x1c3   : > { %v1134_v34 = vrot.slane %v1007_v19, 6 }
 0x1c4   : > { %v1004_v21 = vpop.xlane.xlu0 %1003 }
 0x1c5   : > { %v1131_v26 = vrot.slane %v1004_v21, 7 }
 0x1c6   : > { %v1013_v50 = vpop.xlane.xlu1 %1012 }
 0x1c7   : > { %v1133_v31 = vsel %vm1132_vm2, %v1131_v26, %v1001_v9  ;;  %v1140_v56 = vrot.slane %v1013_v50, 4 }
 0x1c8   : > { %v1025_v16 = vpop.xlane.xlu0 %1024  ;;  %v1136_v55 = vsel %vm1135_vm3, %v1134_v34, %v1133_v31 }
 0x1ca   : > { %v1010_v18 = vpop.xlane.xlu1 %1009 }
 0x1cb   : > { %v1137_v40 = vrot.slane %v1010_v18, 5 }
 0x1cc   : > { %v1016_v53 = vpop.xlane.xlu0 %1015 }
 0x1cd   : > { %v1139_v23 = vsel %vm1138_vm4, %v1137_v40, %v1136_v55  ;;  %v1143_v37 = vrot.slane %v1016_v53, 3 }
 0x1ce   : > { %v1019_v54 = vpop.xlane.xlu1 %1018  ;;  %v1142_v58 = vsel %vm1141_vm5, %v1140_v56, %v1139_v23  ;;  %v1097_v56 = vld [vmem:[#allocation2 + $0x10] sm:$0xff] }
 0x1cf   : > { %v1146_v57 = vrot.slane %v1019_v54, 2  ;;  %v1145_v52 = vsel %vm1144_vm6, %v1143_v37, %v1142_v58 }
 0x1d0   : > { %v1028_v33 = vpop.xlane.xlu0 %1027 }
 0x1d1   : > { %v1152_v25 = vrot.slane %v1028_v33, 7  ;;  %v1148_v39 = vsel %vm1147_vm7, %v1146_v57, %v1145_v52 }
 0x1d2   : > { %v1031_v60 = vpop.xlane.xlu1 %1030 }
 0x1d3   : > { %v1154_v6 = vrot.slane %v1031_v60, 6  ;;  %v1153_v13 = vsel %vm1132_vm2, %v1152_v25, %v1025_v16 }
 0x1d4   : > { %v1037_v7 = vpop.xlane.xlu0 %1036 }
 0x1d5   : > { %v1155_v42 = vsel %vm1135_vm3, %v1154_v6, %v1153_v13  ;;  %v1158_v47 = vrot.slane %v1037_v7, 4 }
 0x1d6   : > { %v1022_v59 = vpop.xlane.xlu1 %1021 }
 0x1d7   : > { %v1149_v38 = vrot.slane %v1022_v59, 1 }
 0x1d8   : > { %v1049_v41 = vpop.xlane.xlu0 %1048 }
 0x1d9   : > { %v1151_v4 = vsel %vm1150_vm8, %v1149_v38, %v1148_v39 }
 0x1da   : > { %v1198_v11 = vadd.f32 %v1151_v4, %v1095_v35  ;;  %v1034_v2 = vpop.xlane.xlu1 %1033  ;;  %v1098_v4 = vld [vmem:[#allocation2 + $0x18] sm:$0xff] }
 0x1db   : > { %v1156_v12 = vrot.slane %v1034_v2, 5 }
 0x1dc   : > { %1203 = vst.msk [vmem:[#allocation2] sm:$0xff] %vm220_vm1, %v1198_v11  ;;  %v1043_v14 = vpop.xlane.xlu0 %1042  ;;  %v1215_v11 = vld [vmem:[%s1939_s2 + $0x8] sm:$0xff] }
 0x1dd   : > { %v1157_v45 = vsel %vm1138_vm4, %v1156_v12, %v1155_v42  ;;  %v1162_v27 = vrot.slane %v1043_v14, 2  ;;  %v1214_v14 = vld [vmem:[%s1939_s2] sm:$0xff] }
 0x1de   : > { %v1040_v43 = vpop.xlane.xlu1 %1039  ;;  %v1159_v17 = vsel %vm1141_vm5, %v1158_v47, %v1157_v45 }
 0x1df   : > { %v1160_v46 = vrot.slane %v1040_v43, 3  ;;  %v1216_v43 = vld [vmem:[%s1939_s2 + $0x10] sm:$0xff] }
 0x1e0   : > { %v1052_v15 = vpop.xlane.xlu0 %1051 }
 0x1e1   : > { %v1161_v22 = vsel %vm1144_vm6, %v1160_v46, %v1159_v17  ;;  %v1166_v62 = vrot.slane %v1052_v15, 7 }
 0x1e2   : > { %v1055_v20 = vpop.xlane.xlu1 %1054  ;;  %v1163_v48 = vsel %vm1147_vm7, %v1162_v27, %v1161_v22 }
 0x1e3   : > { %v1168_v44 = vrot.slane %v1055_v20, 6  ;;  %v1167_v51 = vsel %vm1132_vm2, %v1166_v62, %v1049_v41  ;;  %v1210_v42 = vld [vmem:[#allocation2] sm:$0xff]  ;;  %v1217_v20 = vld [vmem:[%s1939_s2 + $0x18] sm:$0xff] }
 0x1e4   : > { %v1046_v29 = vpop.xlane.xlu0 %1045  ;;  %v1218_v47 = vmul.f32 %v1214_v14, %v1210_v42 }
 0x1e5   : > { %v1164_v30 = vrot.slane %v1046_v29, 1  ;;  %v1169_v3 = vsel %vm1135_vm3, %v1168_v44, %v1167_v51 }
 0x1e6   : > { %v1061_v61 = vpop.xlane.xlu1 %1060  ;;  %v1222_v22 = vsel %vm220_vm1, %v1218_v47, 0.0 }
 0x1e7   : > { %v1165_v8 = vsel %vm1150_vm8, %v1164_v30, %v1163_v48  ;;  %v1172_v21 = vrot.slane %v1061_v61, 4 }
 0x1e8   : > { %v1199_v10 = vadd.f32 %v1165_v8, %v1096_v28  ;;  %v1073_v32 = vpop.xlane.xlu0 %1072 }
 0x1ea   : > { %1204 = vst.msk [vmem:[#allocation2 + $0x8] sm:$0xff] %vm220_vm1, %v1199_v10  ;;  %v1058_v36 = vpop.xlane.xlu1 %1057 }
 0x1eb   : > { %v1170_v0 = vrot.slane %v1058_v36, 5 }
 0x1ec   : > { %v1067_v63 = vpop.xlane.xlu0 %1066 }
 0x1ed   : > { %v1171_v9 = vsel %vm1138_vm4, %v1170_v0, %v1169_v3  ;;  %v1176_v55 = vrot.slane %v1067_v63, 2 }
 0x1ee   : > { %v1064_v49 = vpop.xlane.xlu1 %1063  ;;  %v1173_v16 = vsel %vm1141_vm5, %v1172_v21, %v1171_v9 }
 0x1ef   : > { %v1174_v19 = vrot.slane %v1064_v49, 3  ;;  %v1236_v49 = vld [vmem:[#allocation3] sm:$0x1] }
 0x1f0   : > { %v1076_v1 = vpop.xlane.xlu0 %1075 }
 0x1f1   : > { %v1180_v5 = vrot.slane %v1076_v1, 7  ;;  %v1175_v40 = vsel %vm1144_vm6, %v1174_v19, %v1173_v16  ;;  %v1211_v2 = vld [vmem:[#allocation2 + $0x8] sm:$0xff] }
 0x1f2   : > { %v1085_v24 = vpop.xlane.xlu1 %1084  ;;  %v1177_v58 = vsel %vm1147_vm7, %v1176_v55, %v1175_v40  ;;  %v1219_v45 = vmul.f32 %v1215_v11, %v1211_v2 }
 0x1f3   : > { %v1181_v18 = vsel %vm1132_vm2, %v1180_v5, %v1073_v32  ;;  %v1186_v37 = vrot.slane %v1085_v24, 4 }
 0x1f4   : > { %v1079_v50 = vpop.xlane.xlu0 %1078  ;;  %v1223_v17 = vsel %vm220_vm1, %v1219_v45, 0.0 }
 0x1f5   : > { %v1182_v26 = vrot.slane %v1079_v50, 6  ;;  %v1224_v29 = vadd.f32 %v1223_v17, %v1222_v22 }
 0x1f6   : > { %v1082_v31 = vpop.xlane.xlu1 %1081 }
 0x1f7   : > { %v1183_v34 = vsel %vm1135_vm3, %v1182_v26, %v1181_v18  ;;  %v1184_v53 = vrot.slane %v1082_v31, 5 }
 0x1f8   : > { %v1070_v54 = vpop.xlane.xlu0 %1069 }
 0x1f9   : > { %v1185_v23 = vsel %vm1138_vm4, %v1184_v53, %v1183_v34  ;;  %v1178_v33 = vrot.slane %v1070_v54, 1 }
 0x1fa   : > { %v1088_v60 = vpop.xlane.xlu1 %1087  ;;  %v1187_v59 = vsel %vm1141_vm5, %v1186_v37, %v1185_v23 }
 0x1fb   : > { %v1179_v57 = vsel %vm1150_vm8, %v1178_v33, %v1177_v58  ;;  %v1188_v7 = vrot.slane %v1088_v60, 3 }
 0x1fc   : > { %v1200_v52 = vadd.f32 %v1179_v57, %v1097_v56  ;;  %v1091_v25 = vpop.xlane.xlu0 %1090 }
 0x1fd   : > { %v1189_v35 = vsel %vm1144_vm6, %v1188_v7, %v1187_v59  ;;  %v1190_v38 = vrot.slane %v1091_v25, 2 }
 0x1fe   : > { %1205 = vst.msk [vmem:[#allocation2 + $0x10] sm:$0xff] %vm220_vm1, %v1200_v52  ;;  %v1094_v39 = vpop.xlane.xlu1 %1093 }
 0x1ff   : > { %v1191_v41 = vsel %vm1147_vm7, %v1190_v38, %v1189_v35  ;;  %v1192_v6 = vrot.slane %v1094_v39, 1 }
 0x201   : > { %v1193_v13 = vsel %vm1150_vm8, %v1192_v6, %v1191_v41 }
 0x202   : > { %v1201_v12 = vadd.f32 %v1193_v13, %v1098_v4 }
 0x204   : > { %1206 = vst.msk [vmem:[#allocation2 + $0x18] sm:$0xff] %vm220_vm1, %v1201_v12 }
 0x205   : > { %v1212_v46 = vld [vmem:[#allocation2 + $0x10] sm:$0xff] }
 0x206   : > { %v1220_v15 = vmul.f32 %v1216_v43, %v1212_v46 }
 0x208   : > { %v1225_v27 = vsel %vm220_vm1, %v1220_v15, 0.0 }
 0x209   : > { %v1226_v48 = vadd.f32 %v1225_v27, %v1224_v29 }
 0x20b   : > { %v1213_v28 = vld [vmem:[#allocation2 + $0x18] sm:$0xff] }
 0x20c   : > { %v1221_v30 = vmul.f32 %v1217_v20, %v1213_v28 }
 0x20e   : > { %v1227_v61 = vsel %vm220_vm1, %v1221_v30, 0.0 }
 0x20f   : > { %v1228_v8 = vadd.f32 %v1227_v61, %v1226_v48 }
 0x211   : > { %v1229_v10 = vrot.slane %v1228_v8, 4 }
 0x213   : > { %v1230_v32 = vadd.f32 %v1229_v10, %v1228_v8 }
 0x215   : > { %v1231_v36 = vrot.slane %v1230_v32, 2 }
 0x217   : > { %v1232_v62 = vadd.f32 %v1231_v36, %v1230_v32 }
 0x219   : > { %v1233_v63 = vrot.slane %v1232_v62, 1 }
 0x21b   : > { %v1234_v44 = vadd.f32 %v1233_v63, %v1232_v62 }
 0x21d   : > { %v1235_v51 = vmul.f32 0.00390625, %v1234_v44 }
 0x21f   : > { %v1237_v0 = vadd.f32 %v1236_v49, %v1235_v51 }
 0x221   : > { %1239 = vst.msk [vmem:[%s214_s29] sm:$0x1] %vm1238_vm9, %v1237_v0 }
 0x222 PF: > { %s16_s19 = sadd.s32 1, %s1593_s19   ;;  %s1942_s17 = smov %s1589_s18 }
 0x223   : > { %p13_p5 = scmp.ge.s32.totalorder %s16_s19, 4   ;;  %s1943_s18 = smov %s1945_s3 }
 0x225   :  { %15 = sbr.rel (!%p13_p5) target bundleno = 3 (0x3), region = 74 }

</bundles_post_ra>
